<compile_context>
chip_gen: v6e
topology: v6e:2x2x1
jax: 0.10.0
libtpu: 0.0.40
codegen_flags: <defaults>
</compile_context>

<pallas_src>
import functools

import jax
import jax.numpy as jnp
from jax.experimental import pallas as pl
from jax.experimental.pallas import tpu as pltpu


def _fused_layernorm_kernel(alpha_ref, beta_ref, x_ref, o_ref, *,
                            eps, num_layers, approx_recip):
    """Applies `num_layers` Layernormalization layers to one resident tile.

    x_ref / o_ref: (row_tile, d_model) VMEM blocks (full-extent last dim).
    alpha_ref / beta_ref: (num_layers,) scalars in SMEM.
    """
    x = x_ref[...].astype(jnp.float32)
    d_model = x.shape[-1]
    inv_n = 1.0 / d_model
    inv_nm1 = 1.0 / (d_model - 1)  # torch.Tensor.std -> unbiased (N-1)

    # num_layers is small & static: Python-unrolled loop (LLO-friendly).
    for layer in range(num_layers):
        alpha = alpha_ref[layer]
        beta = beta_ref[layer]
        mean = jnp.sum(x, axis=-1, keepdims=True) * inv_n
        diff = x - mean
        var = jnp.sum(diff * diff, axis=-1, keepdims=True) * inv_nm1
        std = jnp.sqrt(var)
        denom = std + eps
        if approx_recip:
            # Optional EUP fast path (hidden under DMA anyway).
            x = diff * (alpha * pl.reciprocal(denom, approx=True)) + beta
        else:
            # Exact divide: matches PyTorch numerics; free since HBM-bound.
            x = diff * (alpha / denom) + beta

    o_ref[...] = x.astype(o_ref.dtype)


def _round_up(x, m):
    return (x + m - 1) // m * m


def _vmem_physical_bytes():
    """Physical VMEM per TensorCore; conservative fallback if query fails."""
    try:
        return int(pltpu.get_tpu_info().vmem_capacity_bytes)
    except Exception:
        return 64 << 20  # v7x per-TC size: safe lower bound for all gens


def _choose_row_tile(n_rows, d_lane, itemsize, sublane, vmem_budget_bytes,
                     min_grid_steps=4):
    # Approx VMEM bytes/row: double-buffered in + out at the input dtype plus
    # ~3 f32 working copies of the row inside the kernel.
    per_row = d_lane * (4 * itemsize + 12)
    budget_rows = max(sublane, vmem_budget_bytes // per_row)
    # Larger cap for narrow feature dims so per-step overhead is amortized.
    if d_lane <= 256:
        max_rows = 4096
    elif d_lane <= 1024:
        max_rows = 2048
    else:
        max_rows = 1024
    # Keep >= min_grid_steps grid steps so the "parallel" row axis can be
    # sharded across v7x's two TensorCores.
    share = _round_up(-(-n_rows // min_grid_steps), sublane)
    tile = min(max_rows, budget_rows, share)
    tile = max(sublane, (tile // sublane) * sublane)
    return int(tile)


def encoder_forward(x, alphas, betas, *, eps=1e-6, row_tile=None,
                    approx_reciprocal=False, interpret=False):
    """Fused stack of Layernormalization layers: one pallas_call total."""
    orig_shape = x.shape
    d_model = orig_shape[-1]
    assert d_model > 1, "d_model must be > 1 (unbiased std divides by N-1)"
    num_layers = int(alphas.shape[0])
    assert betas.shape[0] == num_layers

    x2d = x.reshape(-1, d_model)          # free (contiguous) reshape
    n_rows = x2d.shape[0]
    itemsize = jnp.dtype(x.dtype).itemsize
    sublane = max(8, 32 // itemsize)      # f32: 8, bf16: 16, int8/fp8: 32
    d_lane = _round_up(d_model, 128)      # internal lane padding (estimate)

    # Generation-aware VMEM limit: ~75% of physical, capped at 96 MiB.
    vmem_phys = _vmem_physical_bytes()
    vmem_limit = max(32 << 20, min((vmem_phys * 3) // 4, 96 << 20))

    if row_tile is None:
        row_tile = _choose_row_tile(n_rows, d_lane, itemsize, sublane,
                                    vmem_budget_bytes=vmem_limit // 2)
    row_tile = max(sublane, _round_up(int(row_tile), sublane))

    # No padding of x: Pallas handles the partial last row block (OOB reads
    # are garbage but stores are masked; layernorm is row-independent).
    grid = (pl.cdiv(n_rows, row_tile),)

    kernel = functools.partial(
        _fused_layernorm_kernel,
        eps=eps, num_layers=num_layers, approx_recip=approx_reciprocal)

    out = pl.pallas_call(
        kernel,
        out_shape=jax.ShapeDtypeStruct((n_rows, d_model), x.dtype),
        grid=grid,
        in_specs=[
            pl.BlockSpec(memory_space=pltpu.MemorySpace.SMEM),  # alphas
            pl.BlockSpec(memory_space=pltpu.MemorySpace.SMEM),  # betas
            # Full-extent last dim (== d_model) is legal even when not a
            # multiple of 128; row_tile is a sublane multiple.
            pl.BlockSpec((row_tile, d_model), lambda i: (i, 0)),
        ],
        out_specs=pl.BlockSpec((row_tile, d_model), lambda i: (i, 0)),
        compiler_params=pltpu.CompilerParams(
            # Row axis is embarrassingly parallel -> v7x splits it across its
            # 2 TensorCores; no-op on single-TC v5e/v6e.
            dimension_semantics=("parallel",),
            vmem_limit_bytes=int(vmem_limit),
        ),
        interpret=interpret,
    )(alphas.astype(jnp.float32), betas.astype(jnp.float32), x2d)

    return out.reshape(orig_shape)


class Encoder:
    """JAX/Pallas counterpart of the PyTorch Encoder module.

    The reference forward only threads x through `layers`; their contents are
    unspecified, so this encoder is a stack of Layernormalization layers
    fused into a single Pallas kernel.  `src_mask` is accepted for signature
    parity but never consumed (Layernormalization does not use it).
    """

    def __init__(self, feature: int, num_layers: int = 2, eps: float = 1e-6):
        # Per-layer nn.Parameter(torch.ones(1)) / torch.zeros(1), stacked.
        self.alphas = jnp.ones((num_layers,), jnp.float32)
        self.betas = jnp.zeros((num_layers,), jnp.float32)
        # `self.norm` exists in the reference but is never used in forward().
        self.norm_alpha = jnp.ones((1,), jnp.float32)
        self.norm_beta = jnp.zeros((1,), jnp.float32)
        self.eps = eps

    def __call__(self, x, src_mask=None, **kwargs):
        return encoder_forward(x, self.alphas, self.betas, eps=self.eps,
                               **kwargs)


def _reference_encoder(x, alphas, betas, eps=1e-6):
    for layer in range(alphas.shape[0]):
        mean = jnp.mean(x, axis=-1, keepdims=True)
        std = jnp.sqrt(
            jnp.sum((x - mean) ** 2, axis=-1, keepdims=True)
            / (x.shape[-1] - 1))
        x = alphas[layer] * (x - mean) / (std + eps) + betas[layer]
    return x


if __name__ == "__main__":
    key = jax.random.PRNGKey(0)
    batch, seq, d_model = 2, 8, 32

    kx, ka, kb = jax.random.split(key, 3)
    x = jax.random.normal(kx, (batch, seq, d_model), dtype=jnp.float32)
    src_mask = jnp.ones((batch, 1, seq, seq), dtype=jnp.float32)  # unused

    enc = Encoder(feature=d_model, num_layers=2)
    # Non-trivial params to exercise the alpha/beta math (init parity is
    # ones/zeros like the PyTorch module).
    enc.alphas = 1.0 + 0.1 * jax.random.normal(ka, (2,), dtype=jnp.float32)
    enc.betas = 0.1 * jax.random.normal(kb, (2,), dtype=jnp.float32)

    ref = _reference_encoder(x, enc.alphas, enc.betas, eps=enc.eps)
    out = jax.block_until_ready(enc(x, src_mask))
    assert out.shape == (batch, seq, d_model)
    assert jnp.allclose(out, ref, atol=1e-5, rtol=1e-5), \
        "mismatch vs reference (default exact path)"

    # Exercise the partial-last-row-block path (n_rows not a tile multiple).
    x2 = jax.random.normal(kx, (3, 5, d_model), dtype=jnp.float32)
    ref2 = _reference_encoder(x2, enc.alphas, enc.betas, eps=enc.eps)
    out2 = jax.block_until_ready(enc(x2))
    assert out2.shape == (3, 5, d_model)
    assert jnp.allclose(out2, ref2, atol=1e-5, rtol=1e-5), \
        "mismatch vs reference (partial row block)"

    print("KERNEL_OK")
</pallas_src>

<mosaic_0001>
module attributes {stable_mosaic.version = 11 : i64} {
  func.func @_fused_layernorm_kernel(%arg0: i32, %arg1: memref<2xf32, #tpu.memory_space<smem>>, %arg2: memref<2xf32, #tpu.memory_space<smem>>, %arg3: memref<8x32xf32, #tpu.memory_space<vmem>>, %arg4: memref<8x32xf32, #tpu.memory_space<vmem>>) attributes {dimension_semantics = [#tpu.dimension_semantics<parallel>], iteration_bounds = array<i64: 2>, scalar_prefetch = 0 : i64, scratch_operands = 0 : i64, tpu.core_type = #tpu.core_type<tc>, window_params = [{transform_indices = @transform_0, window_bounds = array<i64: 2>}, {transform_indices = @transform_1, window_bounds = array<i64: 2>}, {transform_indices = @transform_2, window_bounds = array<i64: 8, 32>}, {transform_indices = @transform_3, window_bounds = array<i64: 8, 32>}]} {
    %c0 = arith.constant 0 : index
    %c0_0 = arith.constant 0 : index
    %0 = vector.load %arg3[%c0, %c0_0] : memref<8x32xf32, #tpu.memory_space<vmem>>, vector<8x32xf32>
    %c0_1 = arith.constant 0 : index
    %1 = memref.load %arg1[%c0_1] : memref<2xf32, #tpu.memory_space<smem>>
    %c0_2 = arith.constant 0 : index
    %2 = memref.load %arg2[%c0_2] : memref<2xf32, #tpu.memory_space<smem>>
    %cst = arith.constant dense<0.000000e+00> : vector<8xf32>
    %3 = vector.multi_reduction <add>, %0, %cst [1] : vector<8x32xf32> to vector<8xf32>
    %4 = vector.shape_cast %3 : vector<8xf32> to vector<8x1xf32>
    %cst_3 = arith.constant 3.125000e-02 : f32
    %5 = vector.broadcast %cst_3 : f32 to vector<8x1xf32>
    %6 = arith.mulf %4, %5 : vector<8x1xf32>
    %7 = vector.broadcast %6 : vector<8x1xf32> to vector<8x32xf32>
    %8 = arith.subf %0, %7 : vector<8x32xf32>
    %9 = arith.mulf %8, %8 : vector<8x32xf32>
    %cst_4 = arith.constant dense<0.000000e+00> : vector<8xf32>
    %10 = vector.multi_reduction <add>, %9, %cst_4 [1] : vector<8x32xf32> to vector<8xf32>
    %11 = vector.shape_cast %10 : vector<8xf32> to vector<8x1xf32>
    %cst_5 = arith.constant 0.0322580636 : f32
    %12 = vector.broadcast %cst_5 : f32 to vector<8x1xf32>
    %13 = arith.mulf %11, %12 : vector<8x1xf32>
    %14 = math.sqrt %13 : vector<8x1xf32>
    %cst_6 = arith.constant 9.99999997E-7 : f32
    %15 = vector.broadcast %cst_6 : f32 to vector<8x1xf32>
    %16 = arith.addf %14, %15 : vector<8x1xf32>
    %17 = vector.broadcast %1 : f32 to vector<8x1xf32>
    %18 = arith.divf %17, %16 : vector<8x1xf32>
    %19 = vector.broadcast %18 : vector<8x1xf32> to vector<8x32xf32>
    %20 = arith.mulf %8, %19 : vector<8x32xf32>
    %21 = vector.broadcast %2 : f32 to vector<8x32xf32>
    %22 = arith.addf %20, %21 : vector<8x32xf32>
    %c1 = arith.constant 1 : index
    %23 = memref.load %arg1[%c1] : memref<2xf32, #tpu.memory_space<smem>>
    %c1_7 = arith.constant 1 : index
    %24 = memref.load %arg2[%c1_7] : memref<2xf32, #tpu.memory_space<smem>>
    %cst_8 = arith.constant dense<0.000000e+00> : vector<8xf32>
    %25 = vector.multi_reduction <add>, %22, %cst_8 [1] : vector<8x32xf32> to vector<8xf32>
    %26 = vector.shape_cast %25 : vector<8xf32> to vector<8x1xf32>
    %cst_9 = arith.constant 3.125000e-02 : f32
    %27 = vector.broadcast %cst_9 : f32 to vector<8x1xf32>
    %28 = arith.mulf %26, %27 : vector<8x1xf32>
    %29 = vector.broadcast %28 : vector<8x1xf32> to vector<8x32xf32>
    %30 = arith.subf %22, %29 : vector<8x32xf32>
    %31 = arith.mulf %30, %30 : vector<8x32xf32>
    %cst_10 = arith.constant dense<0.000000e+00> : vector<8xf32>
    %32 = vector.multi_reduction <add>, %31, %cst_10 [1] : vector<8x32xf32> to vector<8xf32>
    %33 = vector.shape_cast %32 : vector<8xf32> to vector<8x1xf32>
    %cst_11 = arith.constant 0.0322580636 : f32
    %34 = vector.broadcast %cst_11 : f32 to vector<8x1xf32>
    %35 = arith.mulf %33, %34 : vector<8x1xf32>
    %36 = math.sqrt %35 : vector<8x1xf32>
    %cst_12 = arith.constant 9.99999997E-7 : f32
    %37 = vector.broadcast %cst_12 : f32 to vector<8x1xf32>
    %38 = arith.addf %36, %37 : vector<8x1xf32>
    %39 = vector.broadcast %23 : f32 to vector<8x1xf32>
    %40 = arith.divf %39, %38 : vector<8x1xf32>
    %41 = vector.broadcast %40 : vector<8x1xf32> to vector<8x32xf32>
    %42 = arith.mulf %30, %41 : vector<8x32xf32>
    %43 = vector.broadcast %24 : f32 to vector<8x32xf32>
    %44 = arith.addf %42, %43 : vector<8x32xf32>
    %c0_13 = arith.constant 0 : index
    %c0_14 = arith.constant 0 : index
    %45 = vector.load %arg4[%c0_13, %c0_14] : memref<8x32xf32, #tpu.memory_space<vmem>>, vector<8x32xf32>
    tpu.vector_store %arg4[%c0_13, %c0_14], %44 {strides = array<i32>} : memref<8x32xf32, #tpu.memory_space<vmem>>, vector<8x32xf32>,
    return
  }
  func.func @transform_0(%arg0: i32) -> i32 {
    %c0_i32 = arith.constant 0 : i32
    %c0_i32_0 = arith.constant 0 : i32
    return %c0_i32 : i32
  }
  func.func @transform_1(%arg0: i32) -> i32 {
    %c0_i32 = arith.constant 0 : i32
    %c0_i32_0 = arith.constant 0 : i32
    return %c0_i32 : i32
  }
  func.func @transform_2(%arg0: i32) -> (i32, i32) {
    %c0_i32 = arith.constant 0 : i32
    %c0_i32_0 = arith.constant 0 : i32
    return %arg0, %c0_i32 : i32, i32
  }
  func.func @transform_3(%arg0: i32) -> (i32, i32) {
    %c0_i32 = arith.constant 0 : i32
    %c0_i32_0 = arith.constant 0 : i32
    return %arg0, %c0_i32 : i32, i32
  }
}

</mosaic_0001>

<bundles_post_ra>
// kernel: tpu_custom_call.1
= control target key start
LH: loop header
LB: loop body
LE: loop exit
PB: predicated region body
PF: predicated region fallthrough
CT: control target
= control target key end

     0   :  { %8 = vsyncpa [#allocation5], 0  ;;  %s797_s0 = inlined_call_operand.hbm [shape: f32[2], index: 0, kind: input, shape index: {}]   ;;  %s798_s1 = inlined_call_operand.vmem [shape: f32[2], index: 1, kind: input, shape index: {}]   ;;  %s799_s2 = inlined_call_operand.hbm [shape: f32[16,32], index: 2, kind: input, shape index: {}]   ;;  %s800_s3 = inlined_call_operand.hbm [shape: f32[16,32], index: 3, kind: output, shape index: {}]  }
   0x1   :  { %9 = vsyncpa [#allocation6], 0 }
   0x2   :  { %10 = vsyncpa [#allocation3], 0 }
   0x3   :  { %12 = vsyncpa [#allocation3 + $0x1], 0 }
   0x4   :  { %13 = vsyncpa [#allocation4], 0 }
   0x5   :  { %15 = vsyncpa [#allocation4 + $0x1], 0  ;;  %s619_s12 = smov 0   ;;  %s621_s13 = smov 0  }
   0x6   :  { %s623_s14 = smov 0   ;;  %s625_s15 = smov 0  }
   0x7 LB: > { %s640_s16 = sadd.s32 4294967295, %s593_s15   ;;  %s374_s17 = sadd.s32 4294967294, %s593_s15   ;;  %s593_s15 = sphi %s625_s15, %s824_s15   ;;  %s589_s14 = sphi %s623_s14, %s823_s14   ;;  %s585_s13 = sphi %s621_s13, %s822_s13   ;;  %s581_s12 = sphi %s619_s12, %s821_s12  }
   0x8   : > { %p83_p0 = scmp.ne.s32.totalorder %s585_s13, %s581_s12  ;;  %p801_p1 = scmp.eq.s32.totalorder %s640_s16, 0 }
   0x9   : > { %p107_p2 = scmp.eq.s32.totalorder %s640_s16, 1  ;;  %p113_p3 = scmp.eq.s32.totalorder %s374_s17, 1 }
   0xa   : > { %p649_p4 = por %p801_p1, %p83_p0  ;;  %p375_p5 = scmp.ge.s32.totalorder %s593_s15, 1 }
   0xb   : > { %p654_p6 = por %p113_p3, %p83_p0  ;;  %p120_p7 = scmp.lt.s32.totalorder %s593_s15, 3 }
   0xc   : > { %s805_s18 = scalar_select %p649_p4, 1, 0 }
   0xd   : > { %s806_s19 = scalar_select %p654_p6, 1, 0 }
   0xe   : > { %p659_p8 = pnand %p375_p5, %p120_p7  ;;  %s142_s23 = sshll.u32 %s798_s1, 4  ;;  %s143_s23 = int_to_ptr.vmem [resolvable:$true] %s142_s23 }
   0xf   : > { %s670_s24 = sadd.s32 1, %s593_s15   ;;  %s70_s27 = sadd.s32 1, %s589_s14 }
  0x10   : > { %s807_s20 = scalar_select %p659_p8, 1, 0 }
  0x11   : > { %p404_p10 = pneg %p659_p8  ;;  %s67_s26 = ssub.s32 %s593_s15, %s670_s24 }
  0x12   : > { %p681_p12 = scmp.eq.s32.totalorder %s67_s26, 0  ;;  %s595_s29 = smov [#allocation2]  }
  0x13   : > { %p674_p11 = pnand %p404_p10, %p801_p1  ;;  %s478_s5 = scalar_lea.vmem %s143_s23, 16 }
  0x14   : > { %p479_p13 = scmp.ne.s32.totalorder %s143_s23, %s478_s5  ;;  %p486_p7 = scmp.lt.s32.totalorder %s143_s23, %s143_s23 }
  0x15   : > { %407 = dma.hbm_to_smem (!%p674_p11), %s797_s0, 16, %s595_s29, [#allocation5]  }
  0x16   : > { %p480_p0 = pneg %p674_p11  ;;  %p487_p10 = scmp.lt.s32.totalorder %s478_s5, %s478_s5 }
  0x18   : > { %p481_p3 = pnand %p480_p0, %p479_p13  ;;  %p488_p9 = por %p487_p10, %p486_p7 }
  0x1a   : > { %p482_p5 = pneg %p481_p3 }
  0x1c   : > { %p489_p1 = pnand %p488_p9, %p482_p5 }
  0x1e   : > { %492 = shalt.err (!%p489_p1)
}
  0x1f   : > { %s596_s6 = smov [#allocation7]   ;;  %p77_p13 = scmp.ne.s32.totalorder %s589_s14, %s585_s13 }
  0x20   : > { %410 = dma.vmem_to_smem (!%p674_p11), %s143_s23, 16, %s596_s6, [#allocation6]  }
  0x21   : > { %s697_s7 = scalar_select %p681_p12, %s589_s14, %s70_s27  }
  0x22   : > { %p78_p0 = scmp.eq.s32.totalorder %s593_s15, 0  ;;  %p421_p9 = scmp.lt.s32.totalorder %s593_s15, 2 }
  0x23   : > { %s153_s8 = sand.u32 1, %s589_s14   ;;  %p706_p3 = por %p107_p2, %p77_p13 }
  0x24   : > { %p79_p1 = por %p78_p0, %p77_p13  ;;  %s379_s10 = sshll.u32 %s153_s8, 3 }
  0x25   : > { %s810_s9 = scalar_select %p706_p3, 1, 0 }
  0x26   : > { %s380_s11 = sshll.u32 %s593_s15, 7  ;;  %s157_s23 = scalar_lea.vmem [#allocation8], %s379_s10 }
  0x27   : > { %s714_s22 = scalar_lea.hbm %s799_s2, %s380_s11  ;;  %s164_s25 = sshll.u32 %s157_s23, 4  ;;  %s165_s25 = int_to_ptr.vmem [resolvable:$true] %s164_s25 }
  0x28   : > { %p716_p11 = pnand %p421_p9, %p79_p1  ;;  %s154_s27 = scalar_lea.sflag [#allocation3], %s153_s8 }
  0x29   : > { %s493_s28 = scalar_lea.hbm %s714_s22, 128  ;;  %s498_s4 = scalar_lea.hbm %s799_s2, 256 }
  0x2a   : > { %p494_p2 = scmp.ne.s32.totalorder %s714_s22, %s493_s28  ;;  %p495_p12 = pneg %p716_p11 }
  0x2b   : > { %p499_p10 = scmp.lt.s32.totalorder %s714_s22, %s799_s2  ;;  %p500_p13 = scmp.lt.s32.totalorder %s498_s4, %s493_s28 }
  0x2c   : > { %p496_p5 = pnand %p495_p12, %p494_p2 }
  0x2d   : > { %p501_p0 = por %p500_p13, %p499_p10 }
  0x2e   : > { %p497_p7 = pneg %p496_p5 }
  0x30   : > { %p502_p9 = pnand %p501_p0, %p497_p7 }
  0x32   : > { %505 = shalt.err (!%p502_p9)
}
  0x33   : > { %s506_s10 = scalar_lea.vmem %s165_s25, 128  ;;  %s597_s8 = smov [#allocation8]  }
  0x34   : > { %p507_p1 = scmp.ne.s32.totalorder %s165_s25, %s506_s10  ;;  %s511_s11 = sshll.u32 %s597_s8, 4  ;;  %s512_s11 = int_to_ptr.vmem [resolvable:$false] %s511_s11 }
  0x35   : > { %s513_s17 = scalar_lea.vmem %s512_s11, 256  ;;  %p514_p2 = scmp.lt.s32.totalorder %s165_s25, %s512_s11 }
  0x36   : > { %p509_p6 = pnand %p507_p1, %p495_p12  ;;  %p515_p5 = scmp.lt.s32.totalorder %s513_s17, %s506_s10 }
  0x38   : > { %p510_p3 = pneg %p509_p6  ;;  %p516_p4 = por %p515_p5, %p514_p2 }
  0x3a   : > { %p517_p8 = pnand %p516_p4, %p510_p3 }
  0x3c   : > { %520 = shalt.err (!%p517_p8)
}
  0x3d   : > { %414 = dma.hbm_to_vmem [thread:$0]  (!%p716_p11), %s714_s22, 128, %s165_s25, %s154_s27  }
  0x3e   : > { %p812_p7 = scmp.ne.s32.totalorder %s807_s20, 0 }
  0x3f   : > { %p813_p10 = scmp.eq.s32.totalorder (!%p812_p7), %s640_s16, 0 }
  0x40   : > { %173 = sbr.rel (%p812_p7) target bundleno = 746 (0x2ea), region = 32 }
  0x45   : > { %564 = dma.done.wait (%p813_p10), [#allocation5], 16   ;;  %p814_p6 = pmov %p813_p10 }
  0x47   : > { %566 = vsyncadd (%p814_p6), [#allocation5], 4294967280  ;;  %p815_p12 = pmov %p814_p6 }
  0x48   : > { %p816_p13 = pmov %p814_p6 }
  0x49   : > { %568 = dma.done.wait (%p815_p12), [#allocation6], 16  }
  0x4a   : > { %570 = vsyncadd (%p816_p13), [#allocation6], 4294967280  ;;  %s745_s21 = sand.u32 1, %s585_s13   ;;  %p817_p4 = scmp.ne.s32.totalorder %s805_s18, 0 }
  0x4b   : > { %s384_s20 = sshll.u32 %s745_s21, 3  ;;  %s184_s22 = scalar_lea.sflag [#allocation3], %s745_s21 }
  0x4c   : > { %s187_s23 = scalar_lea.vmem [#allocation8], %s384_s20 }
  0x4d   : > { %572 = dma.done.wait (%p817_p4), %s184_s22, 128  }
  0x4e   : > { %574 = vsyncadd (%p817_p4), %s184_s22, 4294967168 }
  0x4f   : > { %192 = sfence }
  0x50   : > { %v211_v0 = vld [vmem:[%s187_s23] sm:$0xff]  ;;  %vm214_vm0 = vcmask 261120   ;;  %s212_s18 = sld [smem:[#allocation2]]  ;;  %s389_s28 = sshll.u32 %s640_s16, 7 }
  0x51   : > { %v215_v1 = vsel %vm214_vm0, %v211_v0, 0.0  ;;  %s213_s25 = sld [smem:[#allocation7]]  ;;  %s210_s29 = scalar_lea.vmem [#allocation9], %s384_s20 }
  0x52   : > { %216 = vadd.xlane.f32.xlu0 %v215_v1  ;;  %s386_s26 = sld [smem:[#allocation2 + $0x1]]  ;;  %s280_s30 = sshll.u32 %s210_s29, 4  ;;  %s281_s30 = int_to_ptr.vmem [resolvable:$true] %s280_s30 }
  0x53   : > { %s387_s27 = sld [smem:[#allocation7 + $0x1]]  ;;  %s278_s6 = scalar_lea.hbm %s800_s3, %s389_s28 }
  0x54   : > { %s267_s10 = scalar_lea.sflag [#allocation4], %s745_s21  ;;  %s521_s8 = scalar_lea.vmem %s281_s30, 128 }
  0x55   : > { %p522_p8 = scmp.ne.s32.totalorder %s281_s30, %s521_s8  ;;  %p818_p3 = scmp.ne.s32.totalorder %s810_s9, 0 }
  0x56   : > { %v233_v15 = vstv %s212_s18  ;;  %s598_s11 = smov [#allocation9]  }
  0x57   : > { %v237_v18 = vstv %s213_s25  ;;  %p523_p11 = pnand %p522_p8, %p818_p3  ;;  %s525_s16 = sshll.u32 %s598_s11, 4  ;;  %s526_s16 = int_to_ptr.vmem [resolvable:$false] %s525_s16 }
  0x58   : > { %v259_v35 = vstv %s386_s26  ;;  %s527_s17 = scalar_lea.vmem %s526_s16, 256  ;;  %p528_p9 = scmp.lt.s32.totalorder %s281_s30, %s526_s16 }
  0x59   : > { %v263_v38 = vstv %s387_s27  ;;  %p524_p0 = pneg %p523_p11  ;;  %p529_p1 = scmp.lt.s32.totalorder %s527_s17, %s521_s8 }
  0x5b   : > { %p530_p2 = por %p529_p1, %p528_p9 }
  0x5d   : > { %p531_p5 = pnand %p530_p2, %p524_p0 }
  0xdb   : > { %v217_v2 = vpop.xlane.xlu0 %216 }
  0xdc   : > { %v218_v3 = vmul.f32 0.03125, %v217_v2 }
  0xde   : > { %v219_v4 = vsub.f32 %v211_v0, %v218_v3 }
  0xe0   : > { %v220_v5 = vmul.f32 %v219_v4, %v219_v4 }
  0xe2   : > { %v221_v6 = vsel %vm214_vm0, %v220_v5, 0.0 }
  0xe3   : > { %222 = vadd.xlane.f32.xlu0 %v221_v6 }
 0x16c   : > { %v223_v7 = vpop.xlane.xlu0 %222 }
 0x16d   : > { %v224_v8 = vmul.f32 0.032258064, %v223_v7 }
 0x16f   : > { %459 = vrsqrt.f32 %v224_v8  ;;  %vm227_vm1 = vcmp.eq.f32.partialorder %v224_v8, inf  ;;  %v230_v11 = vand.u32 2147483648, %v224_v8  ;;  %vm229_vm2 = vcmp.eq.f32.partialorder %v224_v8, 0.0 }
 0x17c   : > { %v460_v9 = vpop.eup %459 }
 0x17d   : > { %v226_v10 = vmul.f32 %v460_v9, %v224_v8 }
 0x17f   : > { %v228_v12 = vsel %vm227_vm1, %v224_v8, %v226_v10 }
 0x180   : > { %v231_v13 = vsel %vm229_vm2, %v230_v11, %v228_v12 }
 0x181   : > { %v232_v14 = vadd.f32 1e-06, %v231_v13 }
 0x183   : > { %461 = vrcp.f32 %v232_v14 }
 0x190   : > { %v462_v16 = vpop.eup %461 }
 0x191   : > { %v235_v17 = vmul.f32 %v462_v16, %v233_v15 }
 0x193   : > { %v236_v19 = vmul.f32 %v235_v17, %v219_v4 }
 0x195   : > { %v238_v20 = vadd.f32 %v237_v18, %v236_v19 }
 0x197   : > { %v241_v21 = vsel %vm214_vm0, %v238_v20, 0.0 }
 0x198   : > { %242 = vadd.xlane.f32.xlu1 %v241_v21 }
 0x221   : > { %v243_v22 = vpop.xlane.xlu1 %242 }
 0x222   : > { %v244_v23 = vmul.f32 0.03125, %v243_v22 }
 0x224   : > { %v245_v24 = vsub.f32 %v238_v20, %v244_v23 }
 0x226   : > { %v246_v25 = vmul.f32 %v245_v24, %v245_v24 }
 0x228   : > { %v247_v26 = vsel %vm214_vm0, %v246_v25, 0.0 }
 0x229   : > { %248 = vadd.xlane.f32.xlu1 %v247_v26 }
 0x2b2   : > { %v249_v27 = vpop.xlane.xlu1 %248 }
 0x2b3   : > { %v250_v28 = vmul.f32 0.032258064, %v249_v27 }
 0x2b5   : > { %463 = vrsqrt.f32 %v250_v28  ;;  %vm253_vm3 = vcmp.eq.f32.partialorder %v250_v28, inf  ;;  %v256_v31 = vand.u32 2147483648, %v250_v28  ;;  %vm255_vm4 = vcmp.eq.f32.partialorder %v250_v28, 0.0 }
 0x2c2   : > { %v464_v29 = vpop.eup %463 }
 0x2c3   : > { %v252_v30 = vmul.f32 %v464_v29, %v250_v28 }
 0x2c5   : > { %v254_v32 = vsel %vm253_vm3, %v250_v28, %v252_v30 }
 0x2c6   : > { %v257_v33 = vsel %vm255_vm4, %v256_v31, %v254_v32 }
 0x2c7   : > { %v258_v34 = vadd.f32 1e-06, %v257_v33 }
 0x2c9   : > { %465 = vrcp.f32 %v258_v34 }
 0x2d6   : > { %v466_v36 = vpop.eup %465 }
 0x2d7   : > { %v261_v37 = vmul.f32 %v466_v36, %v259_v35 }
 0x2d9   : > { %v262_v39 = vmul.f32 %v261_v37, %v245_v24 }
 0x2db   : > { %v264_v40 = vadd.f32 %v263_v38, %v262_v39 }
 0x2dd   : > { %265 = vst.msk [vmem:[%s210_s29] sm:$0xff] %vm214_vm0, %v264_v40 }
 0x2de   : > { %534 = shalt.err (!%p531_p5)
}
 0x2df   : > { %s535_s20 = scalar_lea.hbm %s278_s6, 128  ;;  %s539_s23 = scalar_lea.hbm %s800_s3, 256 }
 0x2e0   : > { %p536_p7 = scmp.ne.s32.totalorder %s278_s6, %s535_s20  ;;  %p540_p12 = scmp.lt.s32.totalorder %s278_s6, %s800_s3 }
 0x2e1   : > { %p541_p13 = scmp.lt.s32.totalorder %s539_s23, %s535_s20 }
 0x2e2   : > { %p537_p10 = pnand %p536_p7, %p818_p3 }
 0x2e3   : > { %p542_p4 = por %p541_p13, %p540_p12 }
 0x2e4   : > { %p538_p6 = pneg %p537_p10 }
 0x2e6   : > { %p543_p8 = pnand %p542_p4, %p538_p6 }
 0x2e8   : > { %546 = shalt.err (!%p543_p8)
}
 0x2e9   : > { %402 = dma.vmem_to_hbm [thread:$0]  (%p818_p3), %s281_s30, 128, %s278_s6, %s267_s10  }
 0x2ea PF: > { %s292_s26 = sand.u32 1, %s581_s12   ;;  %p819_p11 = scmp.ne.s32.totalorder %s806_s19, 0 }
 0x2eb   : > { %p820_p0 = scmp.ge.s32.totalorder %s593_s15, 2  ;;  %s293_s27 = scalar_lea.sflag [#allocation4], %s292_s26 }
 0x2ed   : > { %p416_p9 = pnand %p820_p0, %p819_p11 }
 0x2ef   : > { %p417_p1 = pneg %p416_p9 }
 0x2f1   : > { %576 = dma.done.wait (%p417_p1), %s293_s27, 128  }
 0x2f2   : > { %578 = vsyncadd (%p417_p1), %s293_s27, 4294967168  ;;  %p18_p2 = scmp.ge.s32.totalorder %s670_s24, 4   ;;  %s821_s12 = smov %s585_s13 }
 0x2f3   : > { %s822_s13 = smov %s589_s14  ;;  %s823_s14 = smov %s697_s7 }
 0x2f4   : > { %s824_s15 = smov %s670_s24  ;;  %20 = sbr.rel (!%p18_p2) target bundleno = 7 (0x7), region = 87 }
 0x2f9   :  { %298 = vsyncpa [#allocation3], 1 }
 0x2fa   :  { %300 = vsyncpa [#allocation3 + $0x1], 1 }
 0x2fb   :  { %301 = vsyncpa [#allocation4], 1 }
 0x2fc   :  { %303 = vsyncpa [#allocation4 + $0x1], 1 }
 0x2fd   :  { %304 = vsyncpa [#allocation5], 1 }
 0x2fe   :  { %306 = vsyncpa [#allocation5 + $0x1], 1 }
 0x2ff   :  { %307 = vsyncpa [#allocation6], 1 }
 0x300   :  { %309 = vsyncpa [#allocation6 + $0x1], 1 }

</bundles_post_ra>
